<compile_context>
chip_gen: v7x
topology: tpu7x:2x2x1
jax: 0.10.0
libtpu: 0.0.40
codegen_flags: <defaults>
</compile_context>

<pallas_src>
import functools

import jax
import jax.numpy as jnp
import numpy as np
from jax.experimental import pallas as pl
from jax.experimental.pallas import tpu as pltpu


_SMOOTH = 1e-4                 # matches `smooth = 0.0001` in dice_loss
_LANE = 128
_MAX_TILE_LANES = 128 * 1024   # ~2.6 MiB per (C,T) f32 temp at C=5
_VMEM_LIMIT = 48 * 1024 * 1024  # < v7x 64 MiB physical, << v5e/v6e 128 MiB


def _round_up(x, m):
    return ((x + m - 1) // m) * m


def _dice_ce_stats_kernel(logits_ref, labels_ref, out_ref, *, hw, tile, needs_mask):
    """Accumulate per-class sums into out_ref (block (1, C, 4), resident over j).

    Columns: 0 = intersect, 1 = sum(p^2), 2 = count, 3 = sum(-log p) at label.
    """
    j = pl.program_id(1)   # pixel-tile index

    @pl.when(j == 0)
    def _init():
        out_ref[...] = jnp.zeros_like(out_ref)

    x = logits_ref[0].astype(jnp.float32)     # (C, T); native dtype in HBM
    lab = labels_ref[0].astype(jnp.int32)     # (1, T); int8 in HBM
    C, T = x.shape

    if needs_mask:
        # Ragged tail: the last pixel tile extends past HW.  Neutralize the
        # out-of-bounds lanes so no garbage/NaN reaches the reductions.
        pos = j * tile + jax.lax.broadcasted_iota(jnp.int32, (1, T), 1)
        valid = pos < hw                      # (1, T) bool
        x = jnp.where(valid, x, 0.0)
        lab = jnp.where(valid, lab, -1)

    # Fused softmax / log-softmax over the class (sublane) axis.
    m = jnp.max(x, axis=0, keepdims=True)         # (1, T)
    z = x - m                                     # (C, T), reused below
    e = jnp.exp(z)                                # (C, T)  (EUP)
    denom = jnp.sum(e, axis=0, keepdims=True)     # (1, T)
    inv = pl.reciprocal(denom, approx=True)       # (1, T)  EUP, off the VALU slots
    p = e * inv                                   # softmax probs
    logp = z - jnp.log(denom)                     # log softmax

    class_ids = jax.lax.broadcasted_iota(jnp.int32, (C, T), 0)
    onehot = (lab == class_ids).astype(jnp.float32)   # (C, T); 0 on masked lanes

    pp = p * p
    if needs_mask:
        pp = jnp.where(valid, pp, 0.0)   # only stat not already killed by onehot==0

    inter = jnp.sum(p * onehot, axis=1, keepdims=True)         # (C, 1)
    sumsq = jnp.sum(pp, axis=1, keepdims=True)                 # (C, 1)
    count = jnp.sum(onehot, axis=1, keepdims=True)             # (C, 1)
    ce_num = -jnp.sum(logp * onehot, axis=1, keepdims=True)    # (C, 1)

    upd = jnp.concatenate([inter, sumsq, count, ce_num], axis=1)   # (C, 4)
    out_ref[...] += upd[None, :, :]


def _dice_ce_stats(predict, label):
    """One fused Pallas pass over (logits, labels) -> (C, 4) per-class sums."""
    N, C, H, W = predict.shape
    HW = H * W

    tile = min(_MAX_TILE_LANES, _round_up(HW, _LANE))
    n_tiles = (HW + tile - 1) // tile
    needs_mask = (HW % tile) != 0

    logits = predict.reshape(N, C, HW)                  # native dtype, no copy
    labels = label.astype(jnp.int8).reshape(N, 1, HW)   # 1 byte/pixel in HBM

    kernel = functools.partial(_dice_ce_stats_kernel,
                               hw=HW, tile=tile, needs_mask=needs_mask)

    partial = pl.pallas_call(
        kernel,
        out_shape=jax.ShapeDtypeStruct((N, C, 4), jnp.float32),
        grid=(N, n_tiles),
        in_specs=[
            pl.BlockSpec((1, C, tile), lambda n, j: (n, 0, j)),
            pl.BlockSpec((1, 1, tile), lambda n, j: (n, 0, j)),
        ],
        # per-batch-row accumulator block -> batch axis can be "parallel"
        out_specs=pl.BlockSpec((1, C, 4), lambda n, j: (n, 0, 0)),
        compiler_params=pltpu.CompilerParams(
            dimension_semantics=("parallel", "arbitrary"),
            vmem_limit_bytes=_VMEM_LIMIT),
    )(logits, labels)

    return jnp.sum(partial, axis=0)   # (C, 4)


def dice_ce_loss(predict, label, num_classes, alpha=1.0, ce=False):
    """Pallas implementation of DiceCeLoss.forward.

    predict: (N, C, H, W) logits (any float dtype); label: (N, H, W) int class ids.
    """
    N, C, H, W = predict.shape
    assert C == num_classes, "channel dim must equal num_classes"
    # NOTE: PyTorch DiceLoss hardcodes F.one_hot(target, 5); its shape assert
    # forces num_classes == 5, which this generic kernel also covers.

    stats = _dice_ce_stats(predict, label)
    inter, sumsq, count, ce_num = (stats[:, 0], stats[:, 1],
                                   stats[:, 2], stats[:, 3])

    # DiceLoss: unit class weights, averaged over classes.
    dice = (2.0 * inter + _SMOOTH) / (count + sumsq + _SMOOTH)
    dice_total = jnp.sum(1.0 - dice) / num_classes
    if not ce:
        return dice_total

    # WeightedCrossEntropyLoss: w_c = 1 - count_c / total pixels, and
    # F.cross_entropy(weight=w, reduction='mean') == sum w_c*ce_num_c / sum w_c*count_c.
    w = 1.0 - count / jnp.sum(count)
    ce_total = jnp.sum(w * ce_num) / jnp.sum(w * count)
    return ce_total + alpha * dice_total


def dice_ce_loss_ref(predict, label, num_classes, alpha=1.0, ce=False):
    """Pure-JAX reference mirroring the PyTorch semantics."""
    predict = predict.astype(jnp.float32)
    p = jax.nn.softmax(predict, axis=1)
    onehot = jnp.transpose(jax.nn.one_hot(label, num_classes, dtype=jnp.float32),
                           (0, 3, 1, 2))
    loss_d = 0.0
    for i in range(num_classes):
        inter = jnp.sum(p[:, i] * onehot[:, i])
        dice = (2.0 * inter + _SMOOTH) / (
            jnp.sum(onehot[:, i]) + jnp.sum(p[:, i] * p[:, i]) + _SMOOTH)
        loss_d = loss_d + (1.0 - dice)
    loss_d = loss_d / num_classes
    if not ce:
        return loss_d
    counts = jnp.stack([jnp.sum((label == c).astype(jnp.float32))
                        for c in range(num_classes)])
    w = 1.0 - counts / jnp.sum(counts)
    logp = jax.nn.log_softmax(predict, axis=1)
    nll = -jnp.take_along_axis(logp, label[:, None, :, :], axis=1)[:, 0]
    pix_w = w[label]
    ce_l = jnp.sum(pix_w * nll) / jnp.sum(pix_w)
    return ce_l + alpha * loss_d


if __name__ == "__main__":
    key = jax.random.PRNGKey(0)
    k_pred, k_lab, k_pred2, k_lab2 = jax.random.split(key, 4)

    # num_classes must be 5 to match DiceLoss's hardcoded F.one_hot(target, 5).
    N, C, H, W = 2, 5, 16, 16
    predict = jax.random.normal(k_pred, (N, C, H, W), dtype=jnp.float32)
    label = jax.random.randint(k_lab, (N, H, W), 0, C, dtype=jnp.int32)

    # Default module config (ce=False -> dice only) and the ce=True branch.
    loss_dice = dice_ce_loss(predict, label, num_classes=C, alpha=1.0, ce=False)
    loss_both = dice_ce_loss(predict, label, num_classes=C, alpha=1.0, ce=True)
    jax.block_until_ready((loss_dice, loss_both))

    ref_dice = dice_ce_loss_ref(predict, label, C, 1.0, False)
    ref_both = dice_ce_loss_ref(predict, label, C, 1.0, True)
    # rtol sized for pl.reciprocal(approx=True) (~2^-12 relative on softmax).
    np.testing.assert_allclose(np.asarray(loss_dice), np.asarray(ref_dice),
                               rtol=5e-3, atol=1e-5)
    np.testing.assert_allclose(np.asarray(loss_both), np.asarray(ref_both),
                               rtol=5e-3, atol=1e-5)

    # Ragged spatial size (HW not a multiple of 128) -> exercises the
    # padding-free in-kernel tail mask.
    H2 = W2 = 15
    predict2 = jax.random.normal(k_pred2, (N, C, H2, W2), dtype=jnp.float32)
    label2 = jax.random.randint(k_lab2, (N, H2, W2), 0, C, dtype=jnp.int32)
    loss2 = dice_ce_loss(predict2, label2, num_classes=C, alpha=1.0, ce=True)
    jax.block_until_ready(loss2)
    ref2 = dice_ce_loss_ref(predict2, label2, C, 1.0, True)
    np.testing.assert_allclose(np.asarray(loss2), np.asarray(ref2),
                               rtol=5e-3, atol=1e-5)

    # bf16 logits go straight into the kernel (no wrapper-side f32 upcast).
    predict_bf16 = predict.astype(jnp.bfloat16)
    loss_bf16 = dice_ce_loss(predict_bf16, label, num_classes=C, alpha=1.0, ce=True)
    jax.block_until_ready(loss_bf16)
    ref_bf16 = dice_ce_loss_ref(predict_bf16.astype(jnp.float32), label, C, 1.0, True)
    np.testing.assert_allclose(np.asarray(loss_bf16), np.asarray(ref_bf16),
                               rtol=1e-2, atol=1e-4)

    print("KERNEL_OK")
</pallas_src>

<mosaic_0001>
module attributes {stable_mosaic.version = 11 : i64} {
  func.func @_dice_ce_stats_kernel(%arg0: i32, %arg1: i32, %arg2: memref<1x5x256xf32, #tpu.memory_space<vmem>>, %arg3: memref<1x1x256xi8, #tpu.memory_space<vmem>>, %arg4: memref<1x5x4xf32, #tpu.memory_space<vmem>>) attributes {dimension_semantics = [#tpu.dimension_semantics<parallel>, #tpu.dimension_semantics<arbitrary>], iteration_bounds = array<i64: 2, 1>, scalar_prefetch = 0 : i64, scratch_operands = 0 : i64, tpu.core_type = #tpu.core_type<tc>, window_params = [{transform_indices = @transform_0, window_bounds = array<i64: 1, 5, 256>}, {transform_indices = @transform_1, window_bounds = array<i64: 1, 1, 256>}, {transform_indices = @transform_2, window_bounds = array<i64: 1, 5, 4>}]} {
    %c0_i32 = arith.constant 0 : i32
    %0 = arith.cmpi eq, %arg1, %c0_i32 : i32
    %1 = arith.extui %0 : i1 to i32
    %c0_i32_0 = arith.constant 0 : i32
    %2 = arith.cmpi ne, %1, %c0_i32_0 : i32
    scf.if %2 {
      %cst_18 = arith.constant 0.000000e+00 : f32
      %44 = vector.broadcast %cst_18 : f32 to vector<1x5x4xf32>
      %c0_19 = arith.constant 0 : index
      %c0_20 = arith.constant 0 : index
      %c0_21 = arith.constant 0 : index
      %45 = vector.load %arg4[%c0_19, %c0_20, %c0_21] : memref<1x5x4xf32, #tpu.memory_space<vmem>>, vector<1x5x4xf32>
      tpu.vector_store %arg4[%c0_19, %c0_20, %c0_21], %44 {strides = array<i32>} : memref<1x5x4xf32, #tpu.memory_space<vmem>>, vector<1x5x4xf32>,
    } else {
    }
    %c0 = arith.constant 0 : index
    %c0_1 = arith.constant 0 : index
    %c0_2 = arith.constant 0 : index
    %3 = vector.load %arg2[%c0, %c0_1, %c0_2] : memref<1x5x256xf32, #tpu.memory_space<vmem>>, vector<1x5x256xf32>
    %4 = vector.shape_cast %3 : vector<1x5x256xf32> to vector<5x256xf32>
    %c0_3 = arith.constant 0 : index
    %c0_4 = arith.constant 0 : index
    %c0_5 = arith.constant 0 : index
    %5 = vector.load %arg3[%c0_3, %c0_4, %c0_5] : memref<1x1x256xi8, #tpu.memory_space<vmem>>, vector<1x1x256xi8>
    %6 = vector.shape_cast %5 : vector<1x1x256xi8> to vector<1x256xi8>
    %7 = arith.extsi %6 : vector<1x256xi8> to vector<1x256xi32>
    %cst = arith.constant dense<0xFF800000> : vector<256xf32>
    %8 = vector.multi_reduction <maximumf>, %4, %cst [0] : vector<5x256xf32> to vector<256xf32>
    %9 = vector.shape_cast %8 : vector<256xf32> to vector<1x256xf32>
    %10 = vector.broadcast %9 : vector<1x256xf32> to vector<5x256xf32>
    %11 = arith.subf %4, %10 : vector<5x256xf32>
    %12 = math.exp %11 : vector<5x256xf32>
    %cst_6 = arith.constant dense<0.000000e+00> : vector<256xf32>
    %13 = vector.multi_reduction <add>, %12, %cst_6 [0] : vector<5x256xf32> to vector<256xf32>
    %14 = vector.shape_cast %13 : vector<256xf32> to vector<1x256xf32>
    %15 = tpu.reciprocal %14 {approx = true} : vector<1x256xf32> -> vector<1x256xf32>
    %16 = vector.broadcast %15 : vector<1x256xf32> to vector<5x256xf32>
    %17 = arith.mulf %12, %16 : vector<5x256xf32>
    %18 = math.log %14 : vector<1x256xf32>
    %19 = vector.broadcast %18 : vector<1x256xf32> to vector<5x256xf32>
    %20 = arith.subf %11, %19 : vector<5x256xf32>
    %21 = tpu.iota {dimensions = array<i32: 0>} : vector<5x256xi32>
    %22 = vector.broadcast %7 : vector<1x256xi32> to vector<5x256xi32>
    %23 = arith.cmpi eq, %22, %21 : vector<5x256xi32>
    %24 = arith.extui %23 : vector<5x256xi1> to vector<5x256xi32>
    %25 = arith.sitofp %24 : vector<5x256xi32> to vector<5x256xf32>
    %26 = arith.mulf %17, %17 : vector<5x256xf32>
    %27 = arith.mulf %17, %25 : vector<5x256xf32>
    %cst_7 = arith.constant dense<0.000000e+00> : vector<5xf32>
    %28 = vector.multi_reduction <add>, %27, %cst_7 [1] : vector<5x256xf32> to vector<5xf32>
    %29 = vector.shape_cast %28 : vector<5xf32> to vector<5x1xf32>
    %cst_8 = arith.constant dense<0.000000e+00> : vector<5xf32>
    %30 = vector.multi_reduction <add>, %26, %cst_8 [1] : vector<5x256xf32> to vector<5xf32>
    %31 = vector.shape_cast %30 : vector<5xf32> to vector<5x1xf32>
    %cst_9 = arith.constant dense<0.000000e+00> : vector<5xf32>
    %32 = vector.multi_reduction <add>, %25, %cst_9 [1] : vector<5x256xf32> to vector<5xf32>
    %33 = vector.shape_cast %32 : vector<5xf32> to vector<5x1xf32>
    %34 = arith.mulf %20, %25 : vector<5x256xf32>
    %cst_10 = arith.constant dense<0.000000e+00> : vector<5xf32>
    %35 = vector.multi_reduction <add>, %34, %cst_10 [1] : vector<5x256xf32> to vector<5xf32>
    %36 = vector.shape_cast %35 : vector<5xf32> to vector<5x1xf32>
    %cst_11 = arith.constant 0.000000e+00 : f32
    %37 = vector.broadcast %cst_11 : f32 to vector<5x1xf32>
    %38 = arith.subf %37, %36 : vector<5x1xf32>
    %39 = tpu.concatenate %29, %31, %33, %38 in 1 : vector<5x1xf32>, vector<5x1xf32>, vector<5x1xf32>, vector<5x1xf32> -> vector<5x4xf32>
    %c0_12 = arith.constant 0 : index
    %c0_13 = arith.constant 0 : index
    %c0_14 = arith.constant 0 : index
    %40 = vector.load %arg4[%c0_12, %c0_13, %c0_14] : memref<1x5x4xf32, #tpu.memory_space<vmem>>, vector<1x5x4xf32>
    %41 = vector.shape_cast %39 : vector<5x4xf32> to vector<1x5x4xf32>
    %42 = arith.addf %40, %41 : vector<1x5x4xf32>
    %c0_15 = arith.constant 0 : index
    %c0_16 = arith.constant 0 : index
    %c0_17 = arith.constant 0 : index
    %43 = vector.load %arg4[%c0_15, %c0_16, %c0_17] : memref<1x5x4xf32, #tpu.memory_space<vmem>>, vector<1x5x4xf32>
    tpu.vector_store %arg4[%c0_15, %c0_16, %c0_17], %42 {strides = array<i32>} : memref<1x5x4xf32, #tpu.memory_space<vmem>>, vector<1x5x4xf32>,
    return
  }
  func.func @transform_0(%arg0: i32, %arg1: i32) -> (i32, i32, i32) {
    %c0_i32 = arith.constant 0 : i32
    %c0_i32_0 = arith.constant 0 : i32
    return %arg0, %c0_i32, %arg1 : i32, i32, i32
  }
  func.func @transform_1(%arg0: i32, %arg1: i32) -> (i32, i32, i32) {
    %c0_i32 = arith.constant 0 : i32
    %c0_i32_0 = arith.constant 0 : i32
    return %arg0, %c0_i32, %arg1 : i32, i32, i32
  }
  func.func @transform_2(%arg0: i32, %arg1: i32) -> (i32, i32, i32) {
    %c0_i32 = arith.constant 0 : i32
    %c0_i32_0 = arith.constant 0 : i32
    %c0_i32_1 = arith.constant 0 : i32
    return %arg0, %c0_i32, %c0_i32_0 : i32, i32, i32
  }
}

</mosaic_0001>

<bundles_post_ra>
// kernel: tpu_custom_call.1
= control target key start
LH: loop header
LB: loop body
LE: loop exit
PB: predicated region body
PF: predicated region fallthrough
CT: control target
= control target key end

     0   :  { %s492_s9 = smov 0   ;;  %s494_s10 = smov 0   ;;  %s553_s0 = inlined_call_operand.vmem [shape: f32[2,5,256], index: 0, kind: input, shape index: {}]   ;;  %s554_s1 = inlined_call_operand.vmem [shape: s8[2,1,256], index: 1, kind: input, shape index: {}]   ;;  %s555_s2 = inlined_call_operand.vmem [shape: f32[2,5,4], index: 2, kind: output, shape index: {}]  }
   0x1   :  { %s496_s11 = smov 0  }
   0x2 LB: > { %s24_s12 = sadd.s32 1, %s470_s10  ;;  %p405_p0 = scmp.ge.s32.totalorder %s474_s11, 1  ;;  %s474_s11 = sphi %s496_s11, %s12_s11   ;;  %s470_s10 = sphi %s494_s10, %s557_s10   ;;  %s466_s9 = sphi %s492_s9, %s556_s9  }
   0x3   : > { %p26_p1 = scmp.ge.s32.totalorder %s24_s12, 2  ;;  %p147_p2 = scmp.lt.s32.totalorder %s474_s11, 3 }
   0x5   : > { %s559_s12 = smov (%p26_p1, %s24_s12), 0  ;;  %p148_p3 = pnand %p405_p0, %p147_p2 }
   0x6   : > { %p181_p4 = scmp.lt.s32.totalorder (!%p148_p3), %s466_s9, 1  ;;  %vm213_vm0 = vcmask (!%p148_p3), 1044480   ;;  %v258_v23 = vlaneseq (!%p148_p3)  ;;  %v476_v47 = vmov (!%p148_p3), 0.0   ;;  %vm207_vm3 = vcmask (!%p148_p3), 28672  }
   0x7   : > { %151 = sbr.rel (%p148_p3) target bundleno = 233 (0xe9), region = 28  ;;  %vm309_vm4 = vcmask (!%p148_p3), 7168   ;;  %vm311_vm5 = vcmask (!%p148_p3), 15360   ;;  %vm313_vm6 = vcmask (!%p148_p3), 23552  }
   0x8   : > { %v259_v29 = vshrl.u32 (!%p148_p3), %v258_v23, 7 }
   0xa   : > { %v262_v36 = vsub.s32 (!%p148_p3), 0, %v259_v29  ;;  %v266_v38 = vsub.s32 (!%p148_p3), 4, %v259_v29 }
   0xe   : > { %s561_s9 = smov (!%p181_p4, %s466_s9), 1 }
   0xf   : > { %s414_s13 = sshll.u32 %s561_s9, 4  ;;  %s408_s17 = sshll.u32 %s561_s9, 1 }
  0x10   : > { %s188_s16 = scalar_lea.vmem %s553_s0, %s414_s13  ;;  %s197_s20 = scalar_lea.vmem %s554_s1, %s408_s17 }
  0x11   : > { %v209_v0 = vld [vmem:[%s188_s16] sm:$0x1f]  ;;  %v210_v1 = vld [vmem:[%s188_s16 + $0x8] sm:$0x1f]  ;;  %s409_s21 = sshll.u32 %s561_s9, 3 }
  0x12   : > { %v214_v2 = vsel %vm213_vm0, %v209_v0, -inf  ;;  %v221_v3 = vsel %vm213_vm0, %v210_v1, -inf  ;;  %v211_v30 = vld [vmem:[%s197_s20] sm:$0x3]  ;;  %s202_s24 = scalar_lea.vmem %s555_s2, %s409_s21 }
  0x13   : > { %v215_v4 = vrot.slane %v214_v2, 4  ;;  %v222_v5 = vrot.slane %v221_v3, 4  ;;  %v212_v34 = vunpack.c.0.s8 %v211_v30  ;;  %208 = vst.msk [vmem:[%s202_s24] sm:$0x1f] %vm207_vm3, %v476_v47 }
  0x15   : > { %v216_v6 = vmax.f32 %v214_v2, %v215_v4  ;;  %v223_v7 = vmax.f32 %v221_v3, %v222_v5  ;;  %v263_v42 = vrot.slane %v212_v34, %v262_v36  ;;  %v267_v43 = vrot.slane %v212_v34, %v266_v38 }
  0x17   : > { %v217_v8 = vrot.slane %v216_v6, 2  ;;  %v224_v9 = vrot.slane %v223_v7, 2  ;;  %v271_v44 = vrot.slane %v263_v42, %v262_v36  ;;  %v275_v45 = vrot.slane %v267_v43, %v262_v36 }
  0x19   : > { %v218_v10 = vmax.f32 %v216_v6, %v217_v8  ;;  %v225_v11 = vmax.f32 %v223_v7, %v224_v9  ;;  %vm276_vm1 = vcmp.eq.s32.totalorder %v271_v44, %v259_v29  ;;  %vm277_vm2 = vcmp.eq.s32.totalorder %v275_v45, %v259_v29 }
  0x1a   : > { %v410_v48 = vsel %vm276_vm1, 1.0, %v476_v47  ;;  %v411_v51 = vsel %vm277_vm2, 1.0, %v476_v47 }
  0x1b   : > { %v219_v12 = vrot.slane %v218_v10, 1  ;;  %v226_v13 = vrot.slane %v225_v11, 1  ;;  %v296_v9 = vsel %vm213_vm0, %v410_v48, 0.0 }
  0x1d   : > { %v220_v14 = vmax.f32 %v218_v10, %v219_v12  ;;  %v227_v15 = vmax.f32 %v225_v11, %v226_v13  ;;  %v297_v10 = vsel %vm213_vm0, %v411_v51, 0.0 }
  0x1e   : > { %v298_v12 = vadd.f32 %v297_v10, %v296_v9 }
  0x1f   : > { %v518_v16 = vsub.f32 %v209_v0, %v220_v14  ;;  %v520_v17 = vsub.f32 %v210_v1, %v227_v15 }
  0x21   : > { %v230_v18 = vmul.f32 1.442695, %v518_v16  ;;  %v232_v19 = vmul.f32 1.442695, %v520_v17 }
  0x23   : > { %440 = vpow2.f32 %v230_v18  ;;  %v315_v18 = vld [vmem:[%s202_s24] sm:$0x1f] }
  0x24   : > { %442 = vpow2.f32 %v232_v19 }
  0x2d   : > { %v441_v20 = vpop.eup %440 }
  0x2e   : > { %v443_v21 = vpop.eup %442  ;;  %v234_v22 = vsel %vm213_vm0, %v441_v20, 0.0 }
  0x2f   : > { %v235_v24 = vrot.slane %v234_v22, 4  ;;  %v241_v25 = vsel %vm213_vm0, %v443_v21, 0.0 }
  0x30   : > { %v242_v26 = vrot.slane %v241_v25, 4 }
  0x31   : > { %v236_v27 = vadd.f32 %v235_v24, %v234_v22 }
  0x32   : > { %v243_v28 = vadd.f32 %v242_v26, %v241_v25 }
  0x33   : > { %v237_v31 = vrot.slane %v236_v27, 2 }
  0x34   : > { %v244_v32 = vrot.slane %v243_v28, 2 }
  0x35   : > { %v238_v33 = vadd.f32 %v237_v31, %v236_v27 }
  0x36   : > { %v245_v35 = vadd.f32 %v244_v32, %v243_v28 }
  0x37   : > { %v239_v37 = vrot.slane %v238_v33, 1 }
  0x38   : > { %v246_v39 = vrot.slane %v245_v35, 1 }
  0x39   : > { %v240_v40 = vadd.f32 %v239_v37, %v238_v33 }
  0x3a   : > { %v247_v41 = vadd.f32 %v246_v39, %v245_v35 }
  0x3b   : > { %444 = vrcp.f32 %v240_v40 }
  0x3c   : > { %446 = vrcp.f32 %v247_v41 }
  0x3d   : > { %448 = vlog2.f32 %v240_v40 }
  0x3e   : > { %450 = vlog2.f32 %v247_v41 }
  0x45   : > { %v445_v46 = vpop.eup %444 }
  0x46   : > { %v447_v49 = vpop.eup %446  ;;  %v250_v50 = vmul.f32 %v445_v46, %v441_v20 }
  0x47   : > { %v449_v52 = vpop.eup %448  ;;  %v251_v53 = vmul.f32 %v447_v49, %v443_v21 }
  0x48   : > { %v451_v54 = vpop.eup %450  ;;  %v284_v55 = vmul.f32 %v410_v48, %v250_v50  ;;  %v253_v56 = vmul.f32 0.6931472, %v449_v52  ;;  %v282_v57 = vmul.f32 %v250_v50, %v250_v50 }
  0x49   : > { %v285_v58 = vmul.f32 %v411_v51, %v251_v53  ;;  %v255_v59 = vmul.f32 0.6931472, %v451_v54  ;;  %v283_v60 = vmul.f32 %v251_v53, %v251_v53 }
  0x4a   : > { %v286_v61 = vsel %vm213_vm0, %v284_v55, 0.0  ;;  %v256_v62 = vsub.f32 %v518_v16, %v253_v56  ;;  %v291_v1 = vsel %vm213_vm0, %v282_v57, 0.0 }
  0x4b   : > { %v287_v63 = vsel %vm213_vm0, %v285_v58, 0.0  ;;  %v257_v0 = vsub.f32 %v520_v17, %v255_v59  ;;  %v292_v2 = vsel %vm213_vm0, %v283_v60, 0.0 }
  0x4c   : > { %v288_v3 = vadd.f32 %v287_v63, %v286_v61  ;;  %v301_v4 = vmul.f32 %v410_v48, %v256_v62  ;;  %v293_v7 = vadd.f32 %v292_v2, %v291_v1 }
  0x4d   : > { %v302_v5 = vmul.f32 %v411_v51, %v257_v0 }
  0x4e   : > { %289 = vadd.xlane.f32.xlu0 %v288_v3  ;;  %v303_v6 = vsel %vm213_vm0, %v301_v4, 0.0 }
  0x4f   : > { %v304_v8 = vsel %vm213_vm0, %v302_v5, 0.0 }
  0x50   : > { %v305_v11 = vadd.f32 %v304_v8, %v303_v6 }
  0x52   : > { %306 = vadd.xlane.f32.xlu1 %v305_v11  ;;  %294 = vadd.xlane.f32.xlu0 %v293_v7 }
  0x56   : > { %299 = vadd.xlane.f32.xlu1 %v298_v12 }
  0xdb   : > { %v290_v13 = vpop.xlane.xlu0 %289 }
  0xdf   : > { %v307_v14 = vpop.xlane.xlu1 %306  ;;  %v295_v15 = vpop.xlane.xlu0 %294 }
  0xe0   : > { %v310_v16 = vsel %vm309_vm4, %v290_v13, %v295_v15  ;;  %v308_v17 = vsub.f32 0.0, %v307_v14 }
  0xe3   : > { %v300_v19 = vpop.xlane.xlu1 %299 }
  0xe4   : > { %v312_v20 = vsel %vm311_vm5, %v310_v16, %v300_v19 }
  0xe5   : > { %v314_v21 = vsel %vm313_vm6, %v312_v20, %v308_v17 }
  0xe6   : > { %v316_v22 = vadd.f32 %v315_v18, %v314_v21 }
  0xe8   : > { %318 = vst.msk [vmem:[%s202_s24] sm:$0x1f] %vm207_vm3, %v316_v22 }
  0xe9 PF: > { %s12_s11 = sadd.s32 1, %s474_s11   ;;  %s556_s9 = smov %s470_s10 }
  0xea   : > { %p9_p5 = scmp.ge.s32.totalorder %s12_s11, 4   ;;  %s557_s10 = smov %s559_s12 }
  0xec   :  { %11 = sbr.rel (!%p9_p5) target bundleno = 2 (0x2), region = 65 }

</bundles_post_ra>
